<compile_context>
chip_gen: v5e
topology: v5e:2x2
jax: 0.10.0
libtpu: 0.0.40
codegen_flags: <defaults>
</compile_context>

<pallas_src>
import jax
import jax.numpy as jnp
from jax.experimental import pallas as pl
from jax.experimental.pallas import tpu as pltpu

_LANE = 128
_SUB = 8


def _make_kernel(C, ts, hw_valid, needs_mask):
    """Builds the per-(batch, pixel-tile) kernel. Input refs are (C, ts, 128)."""

    def kernel(trg_ref, pse_ref, out_ref, acc_ref):
        j = pl.program_id(1)

        @pl.when(j == 0)
        def _():
            acc_ref[...] = jnp.zeros_like(acc_ref)

        # --- pass 1 (unrolled over classes): running argmax of pseudo logits,
        #     the target logit selected by that argmax, running max of target
        #     logits.  Pure VPU work. ---------------------------------------
        trg0 = trg_ref[0].astype(jnp.float32)          # (ts, 128)
        best_p = pse_ref[0].astype(jnp.float32)
        sel_t = trg0
        m = trg0
        for c in range(1, C):
            tc = trg_ref[c].astype(jnp.float32)
            pc = pse_ref[c].astype(jnp.float32)
            upd = pc > best_p                          # strict > keeps first index on ties
            best_p = jnp.where(upd, pc, best_p)
            sel_t = jnp.where(upd, tc, sel_t)
            m = jnp.maximum(m, tc)

        # --- pass 2 (unrolled): sum of exp(trg - max).  EUP work, 1 exp/class.
        s = jnp.exp(trg0 - m)
        for c in range(1, C):
            s = s + jnp.exp(trg_ref[c].astype(jnp.float32) - m)

        # per-pixel CE: logsumexp(trg) - trg[argmax(pse)]
        loss = (m - sel_t) + jnp.log(s)                # (ts, 128)

        if needs_mask:
            r = jax.lax.broadcasted_iota(jnp.int32, (ts, _LANE), 0)
            l = jax.lax.broadcasted_iota(jnp.int32, (ts, _LANE), 1)
            gpix = (j * ts + r) * _LANE + l
            loss = jnp.where(gpix < hw_valid, loss, jnp.float32(0.0))

        # Collapse (ts,128) -> (8,128) with sublane-preserving vreg adds, then
        # do a single small accumulate (1 vld + 1 VPU add + 1 vst per step).
        tile_sum = jnp.sum(loss.reshape(ts // _SUB, _SUB, _LANE), axis=0)
        acc_ref[...] += tile_sum

        @pl.when(j == pl.num_programs(1) - 1)
        def _():
            out_ref[...] = acc_ref[...]                # lane-dense (8,128) store

    return kernel


def pseudo_label_loss(logits_trg, logits_pseudo, weight=1.0,
                      target_block_bytes=2 * 1024 * 1024):
    """logits_trg, logits_pseudo: (N, C, H, W) float arrays (any float dtype)."""
    N, C, H, W = logits_trg.shape
    assert logits_pseudo.shape == logits_trg.shape
    HW = H * W
    itemsize = jnp.dtype(logits_trg.dtype).itemsize

    # ---- pick the pixel tile (TS sublane-rows of 128 pixels each) ----------
    rows = (HW + _LANE - 1) // _LANE                    # 128-pixel rows needed
    rows_r8 = ((rows + _SUB - 1) // _SUB) * _SUB
    ts = target_block_bytes // (C * _LANE * itemsize)   # ~2 MiB per input block
    ts = max(_SUB, min((ts // _SUB) * _SUB, 1024))
    ts = min(ts, rows_r8)
    rows_p = ((rows + ts - 1) // ts) * ts               # padded rows, multiple of ts
    HW_p = rows_p * _LANE
    needs_mask = (HW_p != HW)

    # ---- free reshape to pixel-lane-dense layout (pad only if ragged) ------
    trg = logits_trg.reshape(N, C, HW)
    pse = logits_pseudo.reshape(N, C, HW)
    if needs_mask:
        pad = ((0, 0), (0, 0), (0, HW_p - HW))
        trg = jnp.pad(trg, pad)
        pse = jnp.pad(pse, pad)
    trg = trg.reshape(N, C, rows_p, _LANE)
    pse = pse.reshape(N, C, rows_p, _LANE)

    kernel = _make_kernel(C, ts, HW, needs_mask)

    partials = pl.pallas_call(
        kernel,
        out_shape=jax.ShapeDtypeStruct((N, _SUB, _LANE), jnp.float32),
        grid_spec=pltpu.PrefetchScalarGridSpec(
            num_scalar_prefetch=0,
            grid=(N, rows_p // ts),
            in_specs=[
                pl.BlockSpec((None, C, ts, _LANE), lambda n, j: (n, 0, j, 0)),
                pl.BlockSpec((None, C, ts, _LANE), lambda n, j: (n, 0, j, 0)),
            ],
            out_specs=pl.BlockSpec((None, _SUB, _LANE), lambda n, j: (n, 0, 0)),
            scratch_shapes=[pltpu.VMEM((_SUB, _LANE), jnp.float32)],
        ),
        compiler_params=pltpu.CompilerParams(
            dimension_semantics=("parallel", "arbitrary"),
            vmem_limit_bytes=32 * 1024 * 1024,
        ),
    )(trg, pse)

    # mean over the true (unpadded) pixel count, then weight
    return (jnp.sum(partials) / jnp.float32(N * HW)) * jnp.float32(weight)


def _reference(logits_trg, logits_pseudo, weight):
    # pure-JAX reference for correctness
    labels = jnp.argmax(logits_pseudo, axis=1)                       # (N, H, W)
    logp = jax.nn.log_softmax(logits_trg.astype(jnp.float32), axis=1)
    nll = -jnp.take_along_axis(logp, labels[:, None], axis=1)[:, 0]  # (N, H, W)
    return jnp.mean(nll) * weight


if __name__ == "__main__":
    key = jax.random.PRNGKey(0)
    k1, k2 = jax.random.split(key)
    N, C, H, W = 2, 4, 16, 16
    logits_trg = jax.random.normal(k1, (N, C, H, W), dtype=jnp.float32)
    # stands in for aux_seg_net([img_trg]) output after transform_by_metas
    logits_pseudo = jax.random.normal(k2, (N, C, H, W), dtype=jnp.float32)
    weights = {"loss_pseudo": 1.0}  # deterministic synthetic weight

    out = pseudo_label_loss(logits_trg, logits_pseudo,
                            weight=weights["loss_pseudo"])
    out = jax.block_until_ready(out)

    ref = _reference(logits_trg, logits_pseudo, weights["loss_pseudo"])
    assert jnp.allclose(out, ref, rtol=1e-5, atol=1e-5), (out, ref)
    print("KERNEL_OK")
</pallas_src>

<mosaic_0001>
module attributes {stable_mosaic.version = 11 : i64} {
  func.func @kernel(%arg0: i32, %arg1: i32, %arg2: memref<1x4x8x128xf32, #tpu.memory_space<vmem>>, %arg3: memref<1x4x8x128xf32, #tpu.memory_space<vmem>>, %arg4: memref<1x8x128xf32, #tpu.memory_space<vmem>>, %arg5: memref<8x128xf32, #tpu.memory_space<vmem>>) attributes {dimension_semantics = [#tpu.dimension_semantics<parallel>, #tpu.dimension_semantics<arbitrary>], iteration_bounds = array<i64: 2, 1>, scalar_prefetch = 0 : i64, scratch_operands = 1 : i64, tpu.core_type = #tpu.core_type<tc>, window_params = [{transform_indices = @transform_0, window_bounds = array<i64: 1, 4, 8, 128>}, {transform_indices = @transform_1, window_bounds = array<i64: 1, 4, 8, 128>}, {transform_indices = @transform_2, window_bounds = array<i64: 1, 8, 128>}]} {
    %c0_i32 = arith.constant 0 : i32
    %0 = arith.cmpi eq, %arg1, %c0_i32 : i32
    %1 = arith.extui %0 : i1 to i32
    %c0_i32_0 = arith.constant 0 : i32
    %2 = arith.cmpi ne, %1, %c0_i32_0 : i32
    scf.if %2 {
      %cst_48 = arith.constant 0.000000e+00 : f32
      %70 = vector.broadcast %cst_48 : f32 to vector<8x128xf32>
      %c0_49 = arith.constant 0 : index
      %c0_50 = arith.constant 0 : index
      %71 = vector.load %arg5[%c0_49, %c0_50] : memref<8x128xf32, #tpu.memory_space<vmem>>, vector<8x128xf32>
      tpu.vector_store %arg5[%c0_49, %c0_50], %70 {strides = array<i32>} : memref<8x128xf32, #tpu.memory_space<vmem>>, vector<8x128xf32>,
    } else {
    }
    %c0 = arith.constant 0 : index
    %c0_1 = arith.constant 0 : index
    %c0_2 = arith.constant 0 : index
    %c0_3 = arith.constant 0 : index
    %3 = vector.load %arg2[%c0, %c0_1, %c0_2, %c0_3] : memref<1x4x8x128xf32, #tpu.memory_space<vmem>>, vector<1x1x8x128xf32>
    %4 = vector.shape_cast %3 : vector<1x1x8x128xf32> to vector<8x128xf32>
    %c0_4 = arith.constant 0 : index
    %c0_5 = arith.constant 0 : index
    %c0_6 = arith.constant 0 : index
    %c0_7 = arith.constant 0 : index
    %5 = vector.load %arg3[%c0_4, %c0_5, %c0_6, %c0_7] : memref<1x4x8x128xf32, #tpu.memory_space<vmem>>, vector<1x1x8x128xf32>
    %6 = vector.shape_cast %5 : vector<1x1x8x128xf32> to vector<8x128xf32>
    %c0_8 = arith.constant 0 : index
    %c1 = arith.constant 1 : index
    %c0_9 = arith.constant 0 : index
    %c0_10 = arith.constant 0 : index
    %7 = vector.load %arg2[%c0_8, %c1, %c0_9, %c0_10] : memref<1x4x8x128xf32, #tpu.memory_space<vmem>>, vector<1x1x8x128xf32>
    %8 = vector.shape_cast %7 : vector<1x1x8x128xf32> to vector<8x128xf32>
    %c0_11 = arith.constant 0 : index
    %c1_12 = arith.constant 1 : index
    %c0_13 = arith.constant 0 : index
    %c0_14 = arith.constant 0 : index
    %9 = vector.load %arg3[%c0_11, %c1_12, %c0_13, %c0_14] : memref<1x4x8x128xf32, #tpu.memory_space<vmem>>, vector<1x1x8x128xf32>
    %10 = vector.shape_cast %9 : vector<1x1x8x128xf32> to vector<8x128xf32>
    %11 = arith.cmpf ogt, %10, %6 : vector<8x128xf32>
    %12 = arith.select %11, %10, %6 : vector<8x128xi1>, vector<8x128xf32>
    %13 = arith.select %11, %8, %4 : vector<8x128xi1>, vector<8x128xf32>
    %14 = arith.maximumf %4, %8 : vector<8x128xf32>
    %c0_15 = arith.constant 0 : index
    %c2 = arith.constant 2 : index
    %c0_16 = arith.constant 0 : index
    %c0_17 = arith.constant 0 : index
    %15 = vector.load %arg2[%c0_15, %c2, %c0_16, %c0_17] : memref<1x4x8x128xf32, #tpu.memory_space<vmem>>, vector<1x1x8x128xf32>
    %16 = vector.shape_cast %15 : vector<1x1x8x128xf32> to vector<8x128xf32>
    %c0_18 = arith.constant 0 : index
    %c2_19 = arith.constant 2 : index
    %c0_20 = arith.constant 0 : index
    %c0_21 = arith.constant 0 : index
    %17 = vector.load %arg3[%c0_18, %c2_19, %c0_20, %c0_21] : memref<1x4x8x128xf32, #tpu.memory_space<vmem>>, vector<1x1x8x128xf32>
    %18 = vector.shape_cast %17 : vector<1x1x8x128xf32> to vector<8x128xf32>
    %19 = arith.cmpf ogt, %18, %12 : vector<8x128xf32>
    %20 = arith.select %19, %18, %12 : vector<8x128xi1>, vector<8x128xf32>
    %21 = arith.select %19, %16, %13 : vector<8x128xi1>, vector<8x128xf32>
    %22 = arith.maximumf %14, %16 : vector<8x128xf32>
    %c0_22 = arith.constant 0 : index
    %c3 = arith.constant 3 : index
    %c0_23 = arith.constant 0 : index
    %c0_24 = arith.constant 0 : index
    %23 = vector.load %arg2[%c0_22, %c3, %c0_23, %c0_24] : memref<1x4x8x128xf32, #tpu.memory_space<vmem>>, vector<1x1x8x128xf32>
    %24 = vector.shape_cast %23 : vector<1x1x8x128xf32> to vector<8x128xf32>
    %c0_25 = arith.constant 0 : index
    %c3_26 = arith.constant 3 : index
    %c0_27 = arith.constant 0 : index
    %c0_28 = arith.constant 0 : index
    %25 = vector.load %arg3[%c0_25, %c3_26, %c0_27, %c0_28] : memref<1x4x8x128xf32, #tpu.memory_space<vmem>>, vector<1x1x8x128xf32>
    %26 = vector.shape_cast %25 : vector<1x1x8x128xf32> to vector<8x128xf32>
    %27 = arith.cmpf ogt, %26, %20 : vector<8x128xf32>
    %28 = arith.select %27, %24, %21 : vector<8x128xi1>, vector<8x128xf32>
    %29 = arith.maximumf %22, %24 : vector<8x128xf32>
    %30 = arith.subf %4, %29 : vector<8x128xf32>
    %31 = math.exp %30 : vector<8x128xf32>
    %c0_29 = arith.constant 0 : index
    %c1_30 = arith.constant 1 : index
    %c0_31 = arith.constant 0 : index
    %c0_32 = arith.constant 0 : index
    %32 = vector.load %arg2[%c0_29, %c1_30, %c0_31, %c0_32] : memref<1x4x8x128xf32, #tpu.memory_space<vmem>>, vector<1x1x8x128xf32>
    %33 = vector.shape_cast %32 : vector<1x1x8x128xf32> to vector<8x128xf32>
    %34 = arith.subf %33, %29 : vector<8x128xf32>
    %35 = math.exp %34 : vector<8x128xf32>
    %36 = arith.addf %31, %35 : vector<8x128xf32>
    %c0_33 = arith.constant 0 : index
    %c2_34 = arith.constant 2 : index
    %c0_35 = arith.constant 0 : index
    %c0_36 = arith.constant 0 : index
    %37 = vector.load %arg2[%c0_33, %c2_34, %c0_35, %c0_36] : memref<1x4x8x128xf32, #tpu.memory_space<vmem>>, vector<1x1x8x128xf32>
    %38 = vector.shape_cast %37 : vector<1x1x8x128xf32> to vector<8x128xf32>
    %39 = arith.subf %38, %29 : vector<8x128xf32>
    %40 = math.exp %39 : vector<8x128xf32>
    %41 = arith.addf %36, %40 : vector<8x128xf32>
    %c0_37 = arith.constant 0 : index
    %c3_38 = arith.constant 3 : index
    %c0_39 = arith.constant 0 : index
    %c0_40 = arith.constant 0 : index
    %42 = vector.load %arg2[%c0_37, %c3_38, %c0_39, %c0_40] : memref<1x4x8x128xf32, #tpu.memory_space<vmem>>, vector<1x1x8x128xf32>
    %43 = vector.shape_cast %42 : vector<1x1x8x128xf32> to vector<8x128xf32>
    %44 = arith.subf %43, %29 : vector<8x128xf32>
    %45 = math.exp %44 : vector<8x128xf32>
    %46 = arith.addf %41, %45 : vector<8x128xf32>
    %47 = arith.subf %29, %28 : vector<8x128xf32>
    %48 = math.log %46 : vector<8x128xf32>
    %49 = arith.addf %47, %48 : vector<8x128xf32>
    %50 = tpu.iota {dimensions = array<i32: 0>} : vector<8x128xi32>
    %51 = tpu.iota {dimensions = array<i32: 1>} : vector<8x128xi32>
    %c8_i32 = arith.constant 8 : i32
    %52 = arith.muli %arg1, %c8_i32 : i32
    %53 = vector.broadcast %52 : i32 to vector<8x128xi32>
    %54 = arith.addi %53, %50 : vector<8x128xi32>
    %c128_i32 = arith.constant 128 : i32
    %55 = vector.broadcast %c128_i32 : i32 to vector<8x128xi32>
    %56 = arith.muli %54, %55 : vector<8x128xi32>
    %57 = arith.addi %56, %51 : vector<8x128xi32>
    %c256_i32 = arith.constant 256 : i32
    %58 = vector.broadcast %c256_i32 : i32 to vector<8x128xi32>
    %59 = arith.cmpi slt, %57, %58 : vector<8x128xi32>
    %cst = arith.constant 0.000000e+00 : f32
    %60 = vector.broadcast %cst : f32 to vector<8x128xf32>
    %61 = arith.select %59, %49, %60 : vector<8x128xi1>, vector<8x128xf32>
    %62 = vector.shape_cast %61 : vector<8x128xf32> to vector<1x8x128xf32>
    %cst_41 = arith.constant dense<0.000000e+00> : vector<8x128xf32>
    %63 = vector.multi_reduction <add>, %62, %cst_41 [0] : vector<1x8x128xf32> to vector<8x128xf32>
    %c0_42 = arith.constant 0 : index
    %c0_43 = arith.constant 0 : index
    %64 = vector.load %arg5[%c0_42, %c0_43] : memref<8x128xf32, #tpu.memory_space<vmem>>, vector<8x128xf32>
    %65 = arith.addf %64, %63 : vector<8x128xf32>
    %c0_44 = arith.constant 0 : index
    %c0_45 = arith.constant 0 : index
    %66 = vector.load %arg5[%c0_44, %c0_45] : memref<8x128xf32, #tpu.memory_space<vmem>>, vector<8x128xf32>
    tpu.vector_store %arg5[%c0_44, %c0_45], %65 {strides = array<i32>} : memref<8x128xf32, #tpu.memory_space<vmem>>, vector<8x128xf32>,
    %c0_i32_46 = arith.constant 0 : i32
    %67 = arith.cmpi eq, %arg1, %c0_i32_46 : i32
    %68 = arith.extui %67 : i1 to i32
    %c0_i32_47 = arith.constant 0 : i32
    %69 = arith.cmpi ne, %68, %c0_i32_47 : i32
    scf.if %69 {
      %c0_48 = arith.constant 0 : index
      %c0_49 = arith.constant 0 : index
      %70 = vector.load %arg5[%c0_48, %c0_49] : memref<8x128xf32, #tpu.memory_space<vmem>>, vector<8x128xf32>
      %c0_50 = arith.constant 0 : index
      %c0_51 = arith.constant 0 : index
      %c0_52 = arith.constant 0 : index
      %71 = vector.load %arg4[%c0_50, %c0_51, %c0_52] : memref<1x8x128xf32, #tpu.memory_space<vmem>>, vector<1x8x128xf32>
      %72 = vector.shape_cast %71 : vector<1x8x128xf32> to vector<8x128xf32>
      %73 = vector.shape_cast %70 : vector<8x128xf32> to vector<1x8x128xf32>
      tpu.vector_store %arg4[%c0_50, %c0_51, %c0_52], %73 {strides = array<i32>} : memref<1x8x128xf32, #tpu.memory_space<vmem>>, vector<1x8x128xf32>,
    } else {
    }
    return
  }
  func.func @transform_0(%arg0: i32, %arg1: i32) -> (i32, i32, i32, i32) {
    %c0_i32 = arith.constant 0 : i32
    %c0_i32_0 = arith.constant 0 : i32
    %c0_i32_1 = arith.constant 0 : i32
    return %arg0, %c0_i32, %arg1, %c0_i32_0 : i32, i32, i32, i32
  }
  func.func @transform_1(%arg0: i32, %arg1: i32) -> (i32, i32, i32, i32) {
    %c0_i32 = arith.constant 0 : i32
    %c0_i32_0 = arith.constant 0 : i32
    %c0_i32_1 = arith.constant 0 : i32
    return %arg0, %c0_i32, %arg1, %c0_i32_0 : i32, i32, i32, i32
  }
  func.func @transform_2(%arg0: i32, %arg1: i32) -> (i32, i32, i32) {
    %c0_i32 = arith.constant 0 : i32
    %c0_i32_0 = arith.constant 0 : i32
    %c0_i32_1 = arith.constant 0 : i32
    return %arg0, %c0_i32, %c0_i32_0 : i32, i32, i32
  }
}

</mosaic_0001>

<bundles_post_ra>
// kernel: tpu_custom_call.1
= control target key start
LH: loop header
LB: loop body
LE: loop exit
PB: predicated region body
PF: predicated region fallthrough
CT: control target
= control target key end

     0   :  { %7 = vsyncpa [#allocation4], 0  ;;  %s832_s0 = inlined_call_operand.hbm [shape: f32[2,4,8,128], index: 0, kind: input, shape index: {}]   ;;  %s833_s1 = inlined_call_operand.hbm [shape: f32[2,4,8,128], index: 1, kind: input, shape index: {}]   ;;  %s834_s2 = inlined_call_operand.hbm [shape: f32[2,8,128], index: 2, kind: output, shape index: {}]  }
   0x1   :  { %9 = vsyncpa [#allocation4 + $0x1], 0 }
   0x2   :  { %10 = vsyncpa [#allocation7], 0 }
   0x3   :  { %12 = vsyncpa [#allocation7 + $0x1], 0 }
   0x4   :  { %13 = vsyncpa [#allocation5], 0 }
   0x5   :  { %15 = vsyncpa [#allocation5 + $0x1], 0  ;;  %s684_s9 = smov 0   ;;  %s686_s10 = smov 0  }
   0x6   :  { %s688_s11 = smov 0   ;;  %s690_s12 = smov 0  }
   0x7   :  { %s692_s13 = smov 0   ;;  %s694_s14 = smov 0  }
   0x8 LB: > { %s414_s15 = sadd.s32 4294967295, %s665_s14   ;;  %s415_s16 = sadd.s32 4294967294, %s665_s14   ;;  %s665_s14 = sphi %s694_s14, %s21_s14   ;;  %s661_s13 = sphi %s692_s13, %s844_s13   ;;  %s657_s12 = sphi %s690_s12, %s843_s12   ;;  %s653_s11 = sphi %s688_s11, %s842_s11   ;;  %s649_s10 = sphi %s686_s10, %s841_s10   ;;  %s645_s9 = sphi %s684_s9, %s840_s9  }
   0x9   : > { %s33_s17 = sadd.s32 1, %s661_s13  ;;  %s42_s18 = sadd.s32 1, %s653_s11 }
   0xa   : > { %p35_p0 = scmp.ge.s32.totalorder %s33_s17, 2  ;;  %p49_p1 = scmp.ne.s32.totalorder %s653_s11, %s649_s10 }
   0xb   : > { %p50_p2 = scmp.eq.s32.totalorder %s665_s14, 0  ;;  %p55_p3 = scmp.ne.s32.totalorder %s649_s10, %s645_s9 }
   0xc   : > { %s846_s17 = smov (%p35_p0, %s33_s17), 0  ;;  %p56_p5 = scmp.eq.s32.totalorder %s414_s15, 0 }
   0xd   : > { %p725_p4 = por %p50_p2, %p49_p1  ;;  %s37_s20 = ssub.s32 %s661_s13, %s846_s17 }
   0xe   : > { %p107_p6 = scmp.eq.s32.totalorder %s414_s15, 1  ;;  %p40_p7 = scmp.eq.s32.totalorder %s37_s20, 0 }
   0xf   : > { %p731_p8 = por %p56_p5, %p55_p3  ;;  %p113_p10 = scmp.eq.s32.totalorder %s415_s16, 1 }
  0x10   : > { %p735_p9 = por %p107_p6, %p49_p1  ;;  %p417_p12 = scmp.ge.s32.totalorder %s665_s14, 2 }
  0x11   : > { %s740_s23 = scalar_select %p40_p7, %s653_s11, %s42_s18  }
  0x12   : > { %p742_p11 = por %p113_p10, %p55_p3  ;;  %p457_p13 = scmp.lt.s32.totalorder %s665_s14, 2 }
  0x13   : > { %s749_s25 = sand.u32 1, %s653_s11   ;;  %s438_s27 = sshll.u32 %s661_s13, 5 }
  0x14   : > { %s418_s26 = sshll.u32 %s749_s25, 5  ;;  %s143_s30 = scalar_lea.hbm %s832_s0, %s438_s27 }
  0x15   : > { %s137_s3 = scalar_lea.vmem [#allocation3], %s418_s26  ;;  %s144_s5 = sshll.u32 %s143_s30, 4  ;;  %s145_s5 = int_to_ptr.hbm [resolvable:$true] %s144_s5 }
  0x16   : > { %s146_s4 = sshll.u32 %s137_s3, 4  ;;  %p758_p0 = pnand %p457_p13, %p725_p4  ;;  %s147_s4 = int_to_ptr.vmem [resolvable:$true] %s146_s4 }
  0x17   : > { %p424_p1 = scmp.ge.s32.totalorder %s665_s14, 1  ;;  %s134_s7 = scalar_lea.sflag [#allocation4], %s749_s25 }
  0x18   : > { %s667_s8 = smov 128   ;;  %s668_s15 = smov 8  }
  0x19   : > { %449 = dma.hbm_to_vmem [thread:$0]  (!%p758_p0), %s145_s5, 512, %s147_s4, %s134_s7, %s667_s8, %s667_s8, %s668_s15  }
  0x1a   : > { %p177_p2 = scmp.lt.s32.totalorder %s665_s14, 3  ;;  %s166_s20 = scalar_lea.hbm %s833_s1, %s438_s27 }
  0x1b   : > { %s167_s28 = sshll.u32 %s166_s20, 4  ;;  %s160_s19 = scalar_lea.vmem [#allocation6], %s418_s26  ;;  %s168_s28 = int_to_ptr.hbm [resolvable:$true] %s167_s28 }
  0x1c   : > { %p178_p3 = pnand %p424_p1, %p177_p2  ;;  %s169_s29 = sshll.u32 %s160_s19, 4  ;;  %s170_s29 = int_to_ptr.vmem [resolvable:$true] %s169_s29 }
  0x1d   : > { %s157_s30 = scalar_lea.sflag [#allocation7], %s749_s25  ;;  %s774_s3 = sand.u32 (!%p178_p3), 1, %s649_s10  }
  0x1e   : > { %452 = dma.hbm_to_vmem [thread:$0]  (!%p758_p0), %s168_s28, 512, %s170_s29, %s157_s30, %s667_s8, %s667_s8, %s668_s15  }
  0x1f   : > { %181 = sbr.rel (%p178_p3) target bundleno = 79 (0x4f), region = 28  ;;  %s425_s4 = sshll.u32 (!%p178_p3), %s774_s3, 5 }
  0x20   : > { %s184_s5 = scalar_lea.sflag (!%p178_p3), [#allocation4], %s774_s3  ;;  %s187_s7 = scalar_lea.vmem (!%p178_p3), [#allocation3], %s425_s4 }
  0x24   : > { %632 = dma.done.wait (%p731_p8), %s184_s5, 512  }
  0x25   : > { %634 = vsyncadd (%p731_p8), %s184_s5, 4294966784  ;;  %s194_s25 = scalar_lea.sflag [#allocation7], %s774_s3  ;;  %s783_s26 = scalar_lea.vmem [#allocation6], %s425_s4 }
  0x26   : > { %636 = dma.done.wait (%p731_p8), %s194_s25, 512  }
  0x27   : > { %638 = vsyncadd (%p731_p8), %s194_s25, 4294966784  ;;  %v229_v0 = vld [vmem:[%s187_s7] sm:$0xff]  ;;  %v428_v1 = vld [vmem:[%s187_s7 + $0x8] sm:$0xff]  ;;  %v273_v20 = vlaneseq  ;;  %s427_s21 = sshll.u32 %s774_s3, 3  ;;  %s435_s27 = sshll.u32 %s657_s12, 3 }
  0x28   : > { %v238_v2 = vmax.f32 %v229_v0, %v428_v1  ;;  %v430_v3 = vld [vmem:[%s187_s7 + $0x10] sm:$0xff]  ;;  %v432_v4 = vld [vmem:[%s187_s7 + $0x18] sm:$0xff]  ;;  %v230_v10 = vld [vmem:[%s783_s26] sm:$0xff]  ;;  %s304_s15 = scalar_lea.hbm %s834_s2, %s435_s27  ;;  %s223_s16 = scalar_lea.vmem [#allocation8], %s427_s21 }
  0x29   : > { %v429_v11 = vld [vmem:[%s783_s26 + $0x8] sm:$0xff]  ;;  %v431_v18 = vld [vmem:[%s783_s26 + $0x10] sm:$0xff]  ;;  %v433_v27 = vld [vmem:[%s783_s26 + $0x18] sm:$0xff]  ;;  %v274_v29 = vshrl.u32 %v273_v20, 7  ;;  %v276_v32 = vand.u32 127, %v273_v20  ;;  %s306_s18 = sshll.u32 %s223_s16, 4  ;;  %s307_s18 = int_to_ptr.vmem [resolvable:$true] %s306_s18 }
  0x2a   : > { %v246_v5 = vmax.f32 %v238_v2, %v430_v3  ;;  %vm235_vm0 = vcmp.gt.f32.partialorder %v429_v11, %v230_v10  ;;  %s308_s20 = sshll.u32 %s304_s15, 4  ;;  %s294_s12 = scalar_lea.sflag [#allocation5], %s774_s3  ;;  %s309_s20 = int_to_ptr.hbm [resolvable:$true] %s308_s20 }
  0x2b   : > { %v236_v17 = vsel %vm235_vm0, %v429_v11, %v230_v10  ;;  %v237_v25 = vsel %vm235_vm0, %v428_v1, %v229_v0  ;;  %v280_v33 = vmul.u32 128, %v274_v29  ;;  %s593_s28 = sshra.s32 %s309_s20, 4  ;;  %s599_s4 = scalar_lea.hbm %s834_s2, 16  ;;  %s594_s28 = int_to_ptr.hbm [resolvable:$true] %s593_s28 }
  0x2c   : > { %v253_v6 = vmax.f32 %v246_v5, %v432_v4  ;;  %vm243_vm1 = vcmp.gt.f32.partialorder %v431_v18, %v236_v17  ;;  %s595_s19 = scalar_lea.hbm %s594_s28, 8  ;;  %p600_p7 = scmp.lt.s32.totalorder %s594_s28, %s834_s2 }
  0x2d   : > { %v244_v26 = vsel %vm243_vm1, %v431_v18, %v236_v17  ;;  %v245_v31 = vsel %vm243_vm1, %v430_v3, %v237_v25  ;;  %v281_v35 = vadd.s32 %v280_v33, %v276_v32  ;;  %p596_p4 = scmp.ne.s32.totalorder %s594_s28, %s595_s19  ;;  %p601_p8 = scmp.lt.s32.totalorder %s599_s4, %s595_s19 }
  0x2e   : > { %v254_v7 = vsub.f32 %v229_v0, %v253_v6  ;;  %v257_v8 = vsub.f32 %v428_v1, %v253_v6  ;;  %v261_v9 = vsub.f32 %v430_v3, %v253_v6  ;;  %v265_v12 = vsub.f32 %v432_v4, %v253_v6 }
  0x2f   : > { %vm251_vm2 = vcmp.gt.f32.partialorder %v433_v27, %v244_v26  ;;  %vm282_vm3 = vcmp.lt.s32.totalorder %v281_v35, 256  ;;  %p597_p5 = pnand %p596_p4, %p735_p9  ;;  %p602_p10 = por %p601_p8, %p600_p7 }
  0x30   : > { %v255_v13 = vmul.f32 1.442695, %v254_v7  ;;  %v258_v14 = vmul.f32 1.442695, %v257_v8  ;;  %v262_v15 = vmul.f32 1.442695, %v261_v9  ;;  %v252_v34 = vsel %vm251_vm2, %v432_v4, %v245_v31 }
  0x31   : > { %v266_v16 = vmul.f32 1.442695, %v265_v12  ;;  %v269_v36 = vsub.f32 %v253_v6, %v252_v34  ;;  %p598_p6 = pneg %p597_p5 }
  0x32   : > { %509 = vpow2.f32 %v255_v13 }
  0x33   : > { %511 = vpow2.f32 %v258_v14  ;;  %p603_p13 = pnand %p602_p10, %p598_p6 }
  0x34   : > { %513 = vpow2.f32 %v262_v15 }
  0x35   : > { %515 = vpow2.f32 %v266_v16 }
  0x38   : > { %v510_v19 = vpop.eup %509 }
  0x39   : > { %v512_v21 = vpop.eup %511 }
  0x3a   : > { %v514_v22 = vpop.eup %513  ;;  %v260_v23 = vadd.f32 %v512_v21, %v510_v19 }
  0x3b   : > { %v516_v24 = vpop.eup %515 }
  0x3c   : > { %v264_v28 = vadd.f32 %v514_v22, %v260_v23 }
  0x3e   : > { %v268_v30 = vadd.f32 %v516_v24, %v264_v28 }
  0x40   : > { %517 = vlog2.f32 %v268_v30 }
  0x46   : > { %v518_v37 = vpop.eup %517 }
  0x47   : > { %v271_v38 = vmul.f32 0.6931472, %v518_v37 }
  0x49   : > { %v272_v39 = vadd.f32 %v271_v38, %v269_v36 }
  0x4b   : > { %v283_v40 = vsel %vm282_vm3, %v272_v39, 0.0 }
  0x4c   : > { %292 = vst [vmem:[%s223_s16] sm:$0xff] %v283_v40 }
  0x4d   : > { %606 = shalt.err (!%p603_p13)
}
  0x4e   : > { %444 = dma.vmem_to_hbm [thread:$0]  (%p735_p9), %s307_s18, 128, %s309_s20, %s294_s12  }
  0x4f PF: > { %s320_s3 = sand.u32 1, %s645_s9   ;;  %p454_p0 = pnand %p417_p12, %p742_p11 }
  0x50   : > { %s321_s25 = scalar_lea.sflag [#allocation5], %s320_s3 }
  0x51   : > { %p455_p1 = pneg %p454_p0 }
  0x53   : > { %640 = dma.done.wait (%p455_p1), %s321_s25, 128  }
  0x54   : > { %642 = vsyncadd (%p455_p1), %s321_s25, 4294967168  ;;  %s21_s14 = sadd.s32 1, %s665_s14   ;;  %s840_s9 = smov %s649_s10 }
  0x55   : > { %p18_p2 = scmp.ge.s32.totalorder %s21_s14, 4   ;;  %s841_s10 = smov %s653_s11 }
  0x56   : > { %s842_s11 = smov %s740_s23  ;;  %s843_s12 = smov %s661_s13 }
  0x57   : > { %s844_s13 = smov %s846_s17  ;;  %20 = sbr.rel (!%p18_p2) target bundleno = 8 (0x8), region = 100 }
  0x5c   :  { %327 = vsyncpa [#allocation4], 1 }
  0x5d   :  { %329 = vsyncpa [#allocation4 + $0x1], 1 }
  0x5e   :  { %330 = vsyncpa [#allocation7], 1 }
  0x5f   :  { %332 = vsyncpa [#allocation7 + $0x1], 1 }
  0x60   :  { %333 = vsyncpa [#allocation5], 1 }
  0x61   :  { %335 = vsyncpa [#allocation5 + $0x1], 1 }

</bundles_post_ra>
